<compile_context>
chip_gen: v7x
topology: tpu7x:2x2x1
jax: 0.10.0
libtpu: 0.0.40
codegen_flags: <defaults>
</compile_context>

<pallas_src>
import math

import jax
import jax.numpy as jnp
from jax.experimental import pallas as pl
from jax.experimental.pallas import tpu as pltpu

_LANE = 128
_SUBLANE = 8
_VPU_LAYER1_MAX_K = 32  # run layer 1 on the VPU when n_input <= this


def _round_up(x, m):
    return (x + m - 1) // m * m


def _make_mlp_kernel(n_input, use_vpu_layer1):
    """Fused 3-layer MLP: tanh(x@W1+b1) -> tanh(.@W2+b2) -> .@W3+b3."""

    def kernel(x_ref, w1_ref, b1_ref, w2_ref, b2_ref, w3_ref, b3_ref, o_ref):
        x = x_ref[...]  # f32 (tile_b, n_input)
        if use_vpu_layer1:
            # K is tiny: do layer 1 as K broadcast multiply-adds on the VPU
            # instead of burning an MXU pass on a K=4 contraction.
            w1 = w1_ref[...].astype(jnp.float32)            # (n_input, f_pad)
            h1_pre = b1_ref[...] + x[:, 0:1] * w1[0:1, :]
            for k in range(1, n_input):
                h1_pre = h1_pre + x[:, k:k + 1] * w1[k:k + 1, :]
        else:
            h1_pre = (
                jnp.dot(x.astype(jnp.bfloat16), w1_ref[...],
                        preferred_element_type=jnp.float32)
                + b1_ref[...]
            )
        h1 = jnp.tanh(h1_pre)
        h2 = jnp.tanh(
            jnp.dot(h1.astype(jnp.bfloat16), w2_ref[...],
                    preferred_element_type=jnp.float32)
            + b2_ref[...]
        )
        o_ref[...] = (
            jnp.dot(h2.astype(jnp.bfloat16), w3_ref[...],
                    preferred_element_type=jnp.float32)
            + b3_ref[...]
        )

    return kernel


def _vmem_budget_bytes():
    # v5e/v6e: 128 MiB physical -> use up to 96 MiB; v7x: 64 MiB -> 48 MiB.
    try:
        cap = int(pltpu.get_tpu_info().vmem_capacity_bytes)
    except Exception:
        cap = 64 * 1024 * 1024
    return min(cap * 3 // 4, 96 * 1024 * 1024)


def _forward_pallas(x, params, tile_b, vmem_limit, single_buffer_weights):
    w1, b1, w2, b2, w3, b3 = (params[k] for k in ("w1", "b1", "w2", "b2", "w3", "b3"))
    batch, n_input = x.shape
    f_pad = w1.shape[1]
    n_output = w3.shape[1]

    grid = (pl.cdiv(batch, tile_b),)
    use_vpu_layer1 = n_input <= _VPU_LAYER1_MAX_K

    def resident(shape):
        # Weights / biases stay VMEM-resident across all grid steps.
        if single_buffer_weights:
            # Constant index_map -> the second pipeline buffer is never used.
            return pl.BlockSpec(shape, lambda i: (0, 0), pipeline_mode=pl.Buffered(1))
        return pl.BlockSpec(shape, lambda i: (0, 0))

    resident_bytes = sum(int(a.size) * a.dtype.itemsize for a in (w1, b1, w2, b2, w3, b3))
    flops = 2 * batch * (n_input * f_pad + f_pad * f_pad + f_pad * n_output)
    bytes_accessed = int(x.size) * x.dtype.itemsize + batch * n_output * 4 + resident_bytes

    return pl.pallas_call(
        _make_mlp_kernel(n_input, use_vpu_layer1),
        out_shape=jax.ShapeDtypeStruct((batch, n_output), jnp.float32),
        grid=grid,
        in_specs=[
            pl.BlockSpec((tile_b, n_input), lambda i: (i, 0)),
            resident((n_input, f_pad)),
            resident((1, f_pad)),
            resident((f_pad, f_pad)),
            resident((1, f_pad)),
            resident((f_pad, n_output)),
            resident((1, n_output)),
        ],
        out_specs=pl.BlockSpec((tile_b, n_output), lambda i: (i, 0)),
        compiler_params=pltpu.CompilerParams(
            # TODO(synk): verify on v7x that "parallel" shards the batch grid
            # across both TensorCores (else switch to CORE_PARALLEL / core axis).
            dimension_semantics=("parallel",),
            vmem_limit_bytes=int(vmem_limit),
        ),
        cost_estimate=pl.CostEstimate(
            flops=flops,
            transcendentals=2 * batch * f_pad,
            bytes_accessed=bytes_accessed,
        ),
    )(x, w1, b1, w2, b2, w3, b3)


def network_forward(state, params, *, tile_b_max=4096):
    """Equivalent of Network.forward(state)."""
    # torch.squeeze(state, -1): drop trailing dim only if it equals 1.
    if state.ndim >= 1 and state.shape[-1] == 1:
        state = jnp.squeeze(state, -1)
    x = state.astype(jnp.float32)

    batch, n_input = x.shape
    f_pad = params["w2"].shape[0]
    n_output = params["w3"].shape[1]

    budget = _vmem_budget_bytes()
    resident_bytes = sum(
        int(params[k].size) * params[k].dtype.itemsize
        for k in ("w1", "b1", "w2", "b2", "w3", "b3")
    )
    # Per-row VMEM: double-buffered input/output blocks + f32 h1/h2 intermediates.
    per_row = 2 * 4 * n_input + 2 * 4 * n_output + 4 * 4 * f_pad
    avail = budget - 2 * resident_bytes - (4 << 20)
    tile_b = min(tile_b_max, max(_SUBLANE, avail // per_row), _round_up(batch, _SUBLANE))
    tile_b = max(_SUBLANE, tile_b // _SUBLANE * _SUBLANE)

    try:
        return _forward_pallas(x, params, tile_b, budget, single_buffer_weights=True)
    except Exception:
        # pl.Buffered(1) on the resident specs not supported by this jax build;
        # fall back to default double-buffered weights (identical results).
        return _forward_pallas(x, params, tile_b, budget, single_buffer_weights=False)


def _xavier_uniform(key, fan_in, fan_out, gain):
    bound = gain * math.sqrt(6.0 / (fan_in + fan_out))
    # Stored pre-transposed as (fan_in, fan_out) so the kernel computes x @ W.
    return jax.random.uniform(key, (fan_in, fan_out), jnp.float32, minval=-bound, maxval=bound)


def _linear_bias(key, fan_in, fan_out):
    bound = 1.0 / math.sqrt(fan_in)  # torch nn.Linear default bias init
    return jax.random.uniform(key, (1, fan_out), jnp.float32, minval=-bound, maxval=bound)


def _pad_to(a, shape):
    return jnp.pad(a, [(0, t - s) for s, t in zip(a.shape, shape)])


def init_params(key, n_input, n_features, n_output):
    """Torch-equivalent init. Weights stored bf16 (MXU operands), biases f32.

    The hidden dim is zero-padded to a lane multiple; padded columns are exactly
    zero so they never leak (tanh(0)=0 and the padded w3 rows multiply zeros).
    The output dim is NOT padded: a narrow masked store beats a 128-wide HBM
    round trip + wrapper slice for tiny n_output.
    """
    gain_tanh = 5.0 / 3.0  # nn.init.calculate_gain('tanh')
    gain_lin = 1.0
    # TODO(synk): pad hidden dim to 256 on v6e/v7x when n_features > 128 (MXU tile depth).
    f_pad = _round_up(n_features, _LANE)

    k = jax.random.split(key, 6)
    w1 = _pad_to(_xavier_uniform(k[0], n_input, n_features, gain_tanh), (n_input, f_pad))
    b1 = _pad_to(_linear_bias(k[1], n_input, n_features), (1, f_pad))
    w2 = _pad_to(_xavier_uniform(k[2], n_features, n_features, gain_tanh), (f_pad, f_pad))
    b2 = _pad_to(_linear_bias(k[3], n_features, n_features), (1, f_pad))
    w3 = _pad_to(_xavier_uniform(k[4], n_features, n_output, gain_lin), (f_pad, n_output))
    b3 = _linear_bias(k[5], n_features, n_output)
    return dict(
        w1=w1.astype(jnp.bfloat16), b1=b1,
        w2=w2.astype(jnp.bfloat16), b2=b2,
        w3=w3.astype(jnp.bfloat16), b3=b3,
    )


def _ref_forward(state, params):
    # Pure-JAX f32 reference (uses the same bf16-quantized weights, cast to f32).
    if state.ndim >= 1 and state.shape[-1] == 1:
        state = jnp.squeeze(state, -1)
    x = state.astype(jnp.float32)
    h = jnp.tanh(x @ params["w1"].astype(jnp.float32) + params["b1"])
    h = jnp.tanh(h @ params["w2"].astype(jnp.float32) + params["b2"])
    return h @ params["w3"].astype(jnp.float32) + params["b3"]


if __name__ == "__main__":
    key = jax.random.PRNGKey(0)
    k_param, k_s1, k_s2, k_param2, k_s3 = jax.random.split(key, 5)

    # Small shapes consistent with the module (n_input = input_shape[-1]).
    batch, n_input, n_features, n_output = 8, 4, 32, 2
    params = init_params(k_param, n_input, n_features, n_output)

    # Exercises the torch.squeeze(state, -1) path.
    state = jax.random.normal(k_s1, (batch, n_input, 1), jnp.float32)
    out = jax.block_until_ready(network_forward(state, params))
    ref = _ref_forward(state, params)
    assert out.shape == (batch, n_output)
    assert jnp.allclose(out, ref, atol=5e-2, rtol=5e-2), (
        f"mismatch vs reference: max abs diff {jnp.max(jnp.abs(out - ref))}")

    # Multi-step grid + partial last block (200 rows, 64-row tiles).
    state2 = jax.random.normal(k_s2, (200, n_input), jnp.float32)
    out2 = jax.block_until_ready(network_forward(state2, params, tile_b_max=64))
    ref2 = _ref_forward(state2, params)
    assert out2.shape == (200, n_output)
    assert jnp.allclose(out2, ref2, atol=5e-2, rtol=5e-2), "mismatch vs reference (tiled)"

    # Wide-input path: layer 1 on the MXU with bf16 operands.
    params3 = init_params(k_param2, 192, n_features, n_output)
    state3 = jax.random.normal(k_s3, (16, 192), jnp.float32)
    out3 = jax.block_until_ready(network_forward(state3, params3))
    ref3 = _ref_forward(state3, params3)
    assert out3.shape == (16, n_output)
    assert jnp.allclose(out3, ref3, atol=5e-2, rtol=5e-2), "mismatch vs reference (wide input)"

    print("KERNEL_OK")
</pallas_src>

<mosaic_0001>
module attributes {stable_mosaic.version = 11 : i64} {
  func.func @kernel(%arg0: i32, %arg1: memref<8x4xf32, #tpu.memory_space<vmem>>, %arg2: memref<4x128xbf16, #tpu.memory_space<vmem>>, %arg3: memref<1x128xf32, #tpu.memory_space<vmem>>, %arg4: memref<128x128xbf16, #tpu.memory_space<vmem>>, %arg5: memref<1x128xf32, #tpu.memory_space<vmem>>, %arg6: memref<128x2xbf16, #tpu.memory_space<vmem>>, %arg7: memref<1x2xf32, #tpu.memory_space<vmem>>, %arg8: memref<8x2xf32, #tpu.memory_space<vmem>>) attributes {dimension_semantics = [#tpu.dimension_semantics<parallel>], iteration_bounds = array<i64: 1>, scalar_prefetch = 0 : i64, scratch_operands = 0 : i64, tpu.core_type = #tpu.core_type<tc>, window_params = [{transform_indices = @transform_0, window_bounds = array<i64: 8, 4>}, {pipeline_mode = #tpu.pipeline_mode<synchronous>, transform_indices = @transform_1, window_bounds = array<i64: 4, 128>}, {pipeline_mode = #tpu.pipeline_mode<synchronous>, transform_indices = @transform_2, window_bounds = array<i64: 1, 128>}, {pipeline_mode = #tpu.pipeline_mode<synchronous>, transform_indices = @transform_3, window_bounds = array<i64: 128, 128>}, {pipeline_mode = #tpu.pipeline_mode<synchronous>, transform_indices = @transform_4, window_bounds = array<i64: 1, 128>}, {pipeline_mode = #tpu.pipeline_mode<synchronous>, transform_indices = @transform_5, window_bounds = array<i64: 128, 2>}, {pipeline_mode = #tpu.pipeline_mode<synchronous>, transform_indices = @transform_6, window_bounds = array<i64: 1, 2>}, {transform_indices = @transform_7, window_bounds = array<i64: 8, 2>}]} {
    %c0 = arith.constant 0 : index
    %c0_0 = arith.constant 0 : index
    %0 = vector.load %arg1[%c0, %c0_0] : memref<8x4xf32, #tpu.memory_space<vmem>>, vector<8x4xf32>
    %c0_1 = arith.constant 0 : index
    %c0_2 = arith.constant 0 : index
    %1 = vector.load %arg2[%c0_1, %c0_2] : memref<4x128xbf16, #tpu.memory_space<vmem>>, vector<4x128xbf16>
    %2 = arith.extf %1 : vector<4x128xbf16> to vector<4x128xf32>
    %c0_3 = arith.constant 0 : index
    %c0_4 = arith.constant 0 : index
    %3 = vector.load %arg3[%c0_3, %c0_4] : memref<1x128xf32, #tpu.memory_space<vmem>>, vector<1x128xf32>
    %4 = vector.extract_strided_slice %0 {offsets = [0, 0], sizes = [8, 1], strides = [1, 1]} : vector<8x4xf32> to vector<8x1xf32>
    %5 = vector.extract_strided_slice %2 {offsets = [0, 0], sizes = [1, 128], strides = [1, 1]} : vector<4x128xf32> to vector<1x128xf32>
    %6 = vector.broadcast %4 : vector<8x1xf32> to vector<8x128xf32>
    %7 = vector.broadcast %5 : vector<1x128xf32> to vector<8x128xf32>
    %8 = arith.mulf %6, %7 : vector<8x128xf32>
    %9 = vector.broadcast %3 : vector<1x128xf32> to vector<8x128xf32>
    %10 = arith.addf %9, %8 : vector<8x128xf32>
    %11 = vector.extract_strided_slice %0 {offsets = [0, 1], sizes = [8, 1], strides = [1, 1]} : vector<8x4xf32> to vector<8x1xf32>
    %12 = vector.extract_strided_slice %2 {offsets = [1, 0], sizes = [1, 128], strides = [1, 1]} : vector<4x128xf32> to vector<1x128xf32>
    %13 = vector.broadcast %11 : vector<8x1xf32> to vector<8x128xf32>
    %14 = vector.broadcast %12 : vector<1x128xf32> to vector<8x128xf32>
    %15 = arith.mulf %13, %14 : vector<8x128xf32>
    %16 = arith.addf %10, %15 : vector<8x128xf32>
    %17 = vector.extract_strided_slice %0 {offsets = [0, 2], sizes = [8, 1], strides = [1, 1]} : vector<8x4xf32> to vector<8x1xf32>
    %18 = vector.extract_strided_slice %2 {offsets = [2, 0], sizes = [1, 128], strides = [1, 1]} : vector<4x128xf32> to vector<1x128xf32>
    %19 = vector.broadcast %17 : vector<8x1xf32> to vector<8x128xf32>
    %20 = vector.broadcast %18 : vector<1x128xf32> to vector<8x128xf32>
    %21 = arith.mulf %19, %20 : vector<8x128xf32>
    %22 = arith.addf %16, %21 : vector<8x128xf32>
    %23 = vector.extract_strided_slice %0 {offsets = [0, 3], sizes = [8, 1], strides = [1, 1]} : vector<8x4xf32> to vector<8x1xf32>
    %24 = vector.extract_strided_slice %2 {offsets = [3, 0], sizes = [1, 128], strides = [1, 1]} : vector<4x128xf32> to vector<1x128xf32>
    %25 = vector.broadcast %23 : vector<8x1xf32> to vector<8x128xf32>
    %26 = vector.broadcast %24 : vector<1x128xf32> to vector<8x128xf32>
    %27 = arith.mulf %25, %26 : vector<8x128xf32>
    %28 = arith.addf %22, %27 : vector<8x128xf32>
    %29 = math.tanh %28 : vector<8x128xf32>
    %30 = arith.truncf %29 : vector<8x128xf32> to vector<8x128xbf16>
    %c0_5 = arith.constant 0 : index
    %c0_6 = arith.constant 0 : index
    %31 = vector.load %arg4[%c0_5, %c0_6] : memref<128x128xbf16, #tpu.memory_space<vmem>>, vector<128x128xbf16>
    %cst = arith.constant dense<0.000000e+00> : vector<8x128xf32>
    %32 = tpu.matmul %30, %31, %cst {dimension_numbers = #tpu.dot_dimension_numbers<[1], [0], [0], [1], [0, 0, 1, 1], [], []>} : vector<8x128xbf16>, vector<128x128xbf16>, vector<8x128xf32> -> vector<8x128xf32>
    %c0_7 = arith.constant 0 : index
    %c0_8 = arith.constant 0 : index
    %33 = vector.load %arg5[%c0_7, %c0_8] : memref<1x128xf32, #tpu.memory_space<vmem>>, vector<1x128xf32>
    %34 = vector.broadcast %33 : vector<1x128xf32> to vector<8x128xf32>
    %35 = arith.addf %32, %34 : vector<8x128xf32>
    %36 = math.tanh %35 : vector<8x128xf32>
    %37 = arith.truncf %36 : vector<8x128xf32> to vector<8x128xbf16>
    %c0_9 = arith.constant 0 : index
    %c0_10 = arith.constant 0 : index
    %38 = vector.load %arg6[%c0_9, %c0_10] : memref<128x2xbf16, #tpu.memory_space<vmem>>, vector<128x2xbf16>
    %cst_11 = arith.constant dense<0.000000e+00> : vector<8x2xf32>
    %39 = tpu.matmul %37, %38, %cst_11 {dimension_numbers = #tpu.dot_dimension_numbers<[1], [0], [0], [1], [0, 0, 1, 1], [], []>} : vector<8x128xbf16>, vector<128x2xbf16>, vector<8x2xf32> -> vector<8x2xf32>
    %c0_12 = arith.constant 0 : index
    %c0_13 = arith.constant 0 : index
    %40 = vector.load %arg7[%c0_12, %c0_13] : memref<1x2xf32, #tpu.memory_space<vmem>>, vector<1x2xf32>
    %41 = vector.broadcast %40 : vector<1x2xf32> to vector<8x2xf32>
    %42 = arith.addf %39, %41 : vector<8x2xf32>
    %c0_14 = arith.constant 0 : index
    %c0_15 = arith.constant 0 : index
    %43 = vector.load %arg8[%c0_14, %c0_15] : memref<8x2xf32, #tpu.memory_space<vmem>>, vector<8x2xf32>
    tpu.vector_store %arg8[%c0_14, %c0_15], %42 {strides = array<i32>} : memref<8x2xf32, #tpu.memory_space<vmem>>, vector<8x2xf32>,
    return
  }
  func.func @transform_0(%arg0: i32) -> (i32, i32) {
    %c0_i32 = arith.constant 0 : i32
    %c0_i32_0 = arith.constant 0 : i32
    return %arg0, %c0_i32 : i32, i32
  }
  func.func @transform_1(%arg0: i32) -> (i32, i32) {
    %c0_i32 = arith.constant 0 : i32
    %c0_i32_0 = arith.constant 0 : i32
    %c0_i32_1 = arith.constant 0 : i32
    return %c0_i32, %c0_i32_0 : i32, i32
  }
  func.func @transform_2(%arg0: i32) -> (i32, i32) {
    %c0_i32 = arith.constant 0 : i32
    %c0_i32_0 = arith.constant 0 : i32
    %c0_i32_1 = arith.constant 0 : i32
    return %c0_i32, %c0_i32_0 : i32, i32
  }
  func.func @transform_3(%arg0: i32) -> (i32, i32) {
    %c0_i32 = arith.constant 0 : i32
    %c0_i32_0 = arith.constant 0 : i32
    %c0_i32_1 = arith.constant 0 : i32
    return %c0_i32, %c0_i32_0 : i32, i32
  }
  func.func @transform_4(%arg0: i32) -> (i32, i32) {
    %c0_i32 = arith.constant 0 : i32
    %c0_i32_0 = arith.constant 0 : i32
    %c0_i32_1 = arith.constant 0 : i32
    return %c0_i32, %c0_i32_0 : i32, i32
  }
  func.func @transform_5(%arg0: i32) -> (i32, i32) {
    %c0_i32 = arith.constant 0 : i32
    %c0_i32_0 = arith.constant 0 : i32
    %c0_i32_1 = arith.constant 0 : i32
    return %c0_i32, %c0_i32_0 : i32, i32
  }
  func.func @transform_6(%arg0: i32) -> (i32, i32) {
    %c0_i32 = arith.constant 0 : i32
    %c0_i32_0 = arith.constant 0 : i32
    %c0_i32_1 = arith.constant 0 : i32
    return %c0_i32, %c0_i32_0 : i32, i32
  }
  func.func @transform_7(%arg0: i32) -> (i32, i32) {
    %c0_i32 = arith.constant 0 : i32
    %c0_i32_0 = arith.constant 0 : i32
    return %arg0, %c0_i32 : i32, i32
  }
}

module attributes {stable_mosaic.version = 11 : i64} {
  func.func @kernel(%arg0: i32, %arg1: memref<8x4xf32, #tpu.memory_space<vmem>>, %arg2: memref<4x128xbf16, #tpu.memory_space<vmem>>, %arg3: memref<1x128xf32, #tpu.memory_space<vmem>>, %arg4: memref<128x128xbf16, #tpu.memory_space<vmem>>, %arg5: memref<1x128xf32, #tpu.memory_space<vmem>>, %arg6: memref<128x2xbf16, #tpu.memory_space<vmem>>, %arg7: memref<1x2xf32, #tpu.memory_space<vmem>>, %arg8: memref<8x2xf32, #tpu.memory_space<vmem>>) attributes {dimension_semantics = [#tpu.dimension_semantics<parallel>], iteration_bounds = array<i64: 1>, scalar_prefetch = 0 : i64, scratch_operands = 0 : i64, tpu.core_type = #tpu.core_type<tc>, window_params = [{transform_indices = @transform_0, window_bounds = array<i64: 8, 4>}, {pipeline_mode = #tpu.pipeline_mode<synchronous>, transform_indices = @transform_1, window_bounds = array<i64: 4, 128>}, {pipeline_mode = #tpu.pipeline_mode<synchronous>, transform_indices = @transform_2, window_bounds = array<i64: 1, 128>}, {pipeline_mode = #tpu.pipeline_mode<synchronous>, transform_indices = @transform_3, window_bounds = array<i64: 128, 128>}, {pipeline_mode = #tpu.pipeline_mode<synchronous>, transform_indices = @transform_4, window_bounds = array<i64: 1, 128>}, {pipeline_mode = #tpu.pipeline_mode<synchronous>, transform_indices = @transform_5, window_bounds = array<i64: 128, 2>}, {pipeline_mode = #tpu.pipeline_mode<synchronous>, transform_indices = @transform_6, window_bounds = array<i64: 1, 2>}, {transform_indices = @transform_7, window_bounds = array<i64: 8, 2>}]} {
    %c0 = arith.constant 0 : index
    %c0_0 = arith.constant 0 : index
    %0 = vector.load %arg1[%c0, %c0_0] : memref<8x4xf32, #tpu.memory_space<vmem>>, vector<8x4xf32>
    %c0_1 = arith.constant 0 : index
    %c0_2 = arith.constant 0 : index
    %1 = vector.load %arg2[%c0_1, %c0_2] : memref<4x128xbf16, #tpu.memory_space<vmem>>, vector<4x128xbf16>
    %2 = arith.extf %1 : vector<4x128xbf16> to vector<4x128xf32>
    %c0_3 = arith.constant 0 : index
    %c0_4 = arith.constant 0 : index
    %3 = vector.load %arg3[%c0_3, %c0_4] : memref<1x128xf32, #tpu.memory_space<vmem>>, vector<1x128xf32>
    %4 = vector.extract_strided_slice %0 {offsets = [0, 0], sizes = [8, 1], strides = [1, 1]} : vector<8x4xf32> to vector<8x1xf32>
    %5 = vector.extract_strided_slice %2 {offsets = [0, 0], sizes = [1, 128], strides = [1, 1]} : vector<4x128xf32> to vector<1x128xf32>
    %6 = vector.broadcast %4 : vector<8x1xf32> to vector<8x128xf32>
    %7 = vector.broadcast %5 : vector<1x128xf32> to vector<8x128xf32>
    %8 = arith.mulf %6, %7 : vector<8x128xf32>
    %9 = vector.broadcast %3 : vector<1x128xf32> to vector<8x128xf32>
    %10 = arith.addf %9, %8 : vector<8x128xf32>
    %11 = vector.extract_strided_slice %0 {offsets = [0, 1], sizes = [8, 1], strides = [1, 1]} : vector<8x4xf32> to vector<8x1xf32>
    %12 = vector.extract_strided_slice %2 {offsets = [1, 0], sizes = [1, 128], strides = [1, 1]} : vector<4x128xf32> to vector<1x128xf32>
    %13 = vector.broadcast %11 : vector<8x1xf32> to vector<8x128xf32>
    %14 = vector.broadcast %12 : vector<1x128xf32> to vector<8x128xf32>
    %15 = arith.mulf %13, %14 : vector<8x128xf32>
    %16 = arith.addf %10, %15 : vector<8x128xf32>
    %17 = vector.extract_strided_slice %0 {offsets = [0, 2], sizes = [8, 1], strides = [1, 1]} : vector<8x4xf32> to vector<8x1xf32>
    %18 = vector.extract_strided_slice %2 {offsets = [2, 0], sizes = [1, 128], strides = [1, 1]} : vector<4x128xf32> to vector<1x128xf32>
    %19 = vector.broadcast %17 : vector<8x1xf32> to vector<8x128xf32>
    %20 = vector.broadcast %18 : vector<1x128xf32> to vector<8x128xf32>
    %21 = arith.mulf %19, %20 : vector<8x128xf32>
    %22 = arith.addf %16, %21 : vector<8x128xf32>
    %23 = vector.extract_strided_slice %0 {offsets = [0, 3], sizes = [8, 1], strides = [1, 1]} : vector<8x4xf32> to vector<8x1xf32>
    %24 = vector.extract_strided_slice %2 {offsets = [3, 0], sizes = [1, 128], strides = [1, 1]} : vector<4x128xf32> to vector<1x128xf32>
    %25 = vector.broadcast %23 : vector<8x1xf32> to vector<8x128xf32>
    %26 = vector.broadcast %24 : vector<1x128xf32> to vector<8x128xf32>
    %27 = arith.mulf %25, %26 : vector<8x128xf32>
    %28 = arith.addf %22, %27 : vector<8x128xf32>
    %29 = math.tanh %28 : vector<8x128xf32>
    %30 = arith.truncf %29 : vector<8x128xf32> to vector<8x128xbf16>
    %c0_5 = arith.constant 0 : index
    %c0_6 = arith.constant 0 : index
    %31 = vector.load %arg4[%c0_5, %c0_6] : memref<128x128xbf16, #tpu.memory_space<vmem>>, vector<128x128xbf16>
    %cst = arith.constant dense<0.000000e+00> : vector<8x128xf32>
    %32 = tpu.matmul %30, %31, %cst {dimension_numbers = #tpu.dot_dimension_numbers<[1], [0], [0], [1], [0, 0, 1, 1], [], []>} : vector<8x128xbf16>, vector<128x128xbf16>, vector<8x128xf32> -> vector<8x128xf32>
    %c0_7 = arith.constant 0 : index
    %c0_8 = arith.constant 0 : index
    %33 = vector.load %arg5[%c0_7, %c0_8] : memref<1x128xf32, #tpu.memory_space<vmem>>, vector<1x128xf32>
    %34 = vector.broadcast %33 : vector<1x128xf32> to vector<8x128xf32>
    %35 = arith.addf %32, %34 : vector<8x128xf32>
    %36 = math.tanh %35 : vector<8x128xf32>
    %37 = arith.truncf %36 : vector<8x128xf32> to vector<8x128xbf16>
    %c0_9 = arith.constant 0 : index
    %c0_10 = arith.constant 0 : index
    %38 = vector.load %arg6[%c0_9, %c0_10] : memref<128x2xbf16, #tpu.memory_space<vmem>>, vector<128x2xbf16>
    %cst_11 = arith.constant dense<0.000000e+00> : vector<8x2xf32>
    %39 = tpu.matmul %37, %38, %cst_11 {dimension_numbers = #tpu.dot_dimension_numbers<[1], [0], [0], [1], [0, 0, 1, 1], [], []>} : vector<8x128xbf16>, vector<128x2xbf16>, vector<8x2xf32> -> vector<8x2xf32>
    %c0_12 = arith.constant 0 : index
    %c0_13 = arith.constant 0 : index
    %40 = vector.load %arg7[%c0_12, %c0_13] : memref<1x2xf32, #tpu.memory_space<vmem>>, vector<1x2xf32>
    %41 = vector.broadcast %40 : vector<1x2xf32> to vector<8x2xf32>
    %42 = arith.addf %39, %41 : vector<8x2xf32>
    %c0_14 = arith.constant 0 : index
    %c0_15 = arith.constant 0 : index
    %43 = vector.load %arg8[%c0_14, %c0_15] : memref<8x2xf32, #tpu.memory_space<vmem>>, vector<8x2xf32>
    tpu.vector_store %arg8[%c0_14, %c0_15], %42 {strides = array<i32>} : memref<8x2xf32, #tpu.memory_space<vmem>>, vector<8x2xf32>,
    return
  }
  func.func @transform_0(%arg0: i32) -> (i32, i32) {
    %c0_i32 = arith.constant 0 : i32
    %c0_i32_0 = arith.constant 0 : i32
    return %arg0, %c0_i32 : i32, i32
  }
  func.func @transform_1(%arg0: i32) -> (i32, i32) {
    %c0_i32 = arith.constant 0 : i32
    %c0_i32_0 = arith.constant 0 : i32
    %c0_i32_1 = arith.constant 0 : i32
    return %c0_i32, %c0_i32_0 : i32, i32
  }
  func.func @transform_2(%arg0: i32) -> (i32, i32) {
    %c0_i32 = arith.constant 0 : i32
    %c0_i32_0 = arith.constant 0 : i32
    %c0_i32_1 = arith.constant 0 : i32
    return %c0_i32, %c0_i32_0 : i32, i32
  }
  func.func @transform_3(%arg0: i32) -> (i32, i32) {
    %c0_i32 = arith.constant 0 : i32
    %c0_i32_0 = arith.constant 0 : i32
    %c0_i32_1 = arith.constant 0 : i32
    return %c0_i32, %c0_i32_0 : i32, i32
  }
  func.func @transform_4(%arg0: i32) -> (i32, i32) {
    %c0_i32 = arith.constant 0 : i32
    %c0_i32_0 = arith.constant 0 : i32
    %c0_i32_1 = arith.constant 0 : i32
    return %c0_i32, %c0_i32_0 : i32, i32
  }
  func.func @transform_5(%arg0: i32) -> (i32, i32) {
    %c0_i32 = arith.constant 0 : i32
    %c0_i32_0 = arith.constant 0 : i32
    %c0_i32_1 = arith.constant 0 : i32
    return %c0_i32, %c0_i32_0 : i32, i32
  }
  func.func @transform_6(%arg0: i32) -> (i32, i32) {
    %c0_i32 = arith.constant 0 : i32
    %c0_i32_0 = arith.constant 0 : i32
    %c0_i32_1 = arith.constant 0 : i32
    return %c0_i32, %c0_i32_0 : i32, i32
  }
  func.func @transform_7(%arg0: i32) -> (i32, i32) {
    %c0_i32 = arith.constant 0 : i32
    %c0_i32_0 = arith.constant 0 : i32
    return %arg0, %c0_i32 : i32, i32
  }
}

</mosaic_0001>

<bundles_post_ra>
// kernel: tpu_custom_call.1
= control target key start
LH: loop header
LB: loop body
LE: loop exit
PB: predicated region body
PF: predicated region fallthrough
CT: control target
= control target key end

     0   :  { %v418_v0 = vmov 0   ;;  %v419_v2 = vmov 2   ;;  %v420_v4 = vmov 0.0   ;;  %v421_v6 = vmov 1   ;;  %s548_s0 = inlined_call_operand.vmem [shape: f32[8,4], index: 0, kind: input, shape index: {}]   ;;  %s549_s3 = inlined_call_operand.vmem [shape: bf16[128,128], index: 3, kind: input, shape index: {}]   ;;  %s550_s5 = inlined_call_operand.vmem [shape: bf16[128,2], index: 5, kind: input, shape index: {}]   ;;  %s551_s1 = inlined_call_operand.vmem [shape: bf16[4,128], index: 1, kind: input, shape index: {}]   ;;  %s552_s2 = inlined_call_operand.vmem [shape: f32[1,128], index: 2, kind: input, shape index: {}]   ;;  %s553_s4 = inlined_call_operand.vmem [shape: f32[1,128], index: 4, kind: input, shape index: {}]   ;;  %s554_s6 = inlined_call_operand.vmem [shape: f32[1,2], index: 6, kind: input, shape index: {}]   ;;  %s555_s7 = inlined_call_operand.vmem [shape: f32[8,2], index: 7, kind: output, shape index: {}]  }
   0x1   :  { %393 = vset.pattern.permute.xlu0 %v418_v0  ;;  %v27_v1 = vld [vmem:[%s548_s0] sm:$0xff]  ;;  %395 = vset.pattern.permute.xlu1 %v419_v2  ;;  %v399_v5 = vld [vmem:[%s549_s3 + $0x8] sm:$0xff]   ;;  %v422_v7 = vmov 3   ;;  %v400_v8 = vld [vmem:[%s549_s3 + $0x10] sm:$0xff]   ;;  %vm423_vm0 = vmmov 0   ;;  %v36_v18 = vlaneseq  ;;  %vm304_vm1 = vcmask 15360  }
   0x2   :  { %33 = vperm.xlu0 %393, %v27_v1   ;;  %59 = vperm.xlu1 %395, %v27_v1   ;;  %v398_v3 = vld [vmem:[%s549_s3] sm:$0xff]   ;;  %v401_v9 = vld [vmem:[%s549_s3 + $0x18] sm:$0xff]   ;;  %v403_v11 = vld [vmem:[%s549_s3 + $0x28] sm:$0xff]  }
   0x3   :  { %347 = vmatprep.subr.bf16.mxu0 %v420_v4  ;;  %367 = vmatprep.subr.bf16.mxu1 %v420_v4  ;;  %v402_v10 = vld [vmem:[%s549_s3 + $0x20] sm:$0xff]   ;;  %v404_v12 = vld [vmem:[%s549_s3 + $0x30] sm:$0xff]   ;;  %v405_v13 = vld [vmem:[%s549_s3 + $0x38] sm:$0xff]   ;;  %v37_v19 = vshrl.u32 %v36_v18, 7 }
   0x4   :  { %348 = vmatpush3.bf16.msra.mxu0 %v398_v3  ;;  %363 = vmatprep.mubr.msk.bf16.mxu0 %vm423_vm0, %v420_v4  ;;  %v406_v14 = vld [vmem:[%s550_s5] sm:$0xff]   ;;  %v407_v15 = vld [vmem:[%s550_s5 + $0x8] sm:$0xff]   ;;  %v408_v16 = vld [vmem:[%s550_s5 + $0x10] sm:$0xff]  }
   0x5   :  { %349 = vmatprep.subr.bf16.mxu0 %v420_v4  ;;  %383 = vmatprep.mubr.msk.bf16.mxu1 %vm423_vm0, %v420_v4  ;;  %v409_v17 = vld [vmem:[%s550_s5 + $0x18] sm:$0xff]   ;;  %v28_v20 = vld [vmem:[%s551_s1] sm:$0x3]  ;;  %v38_v22 = vsub.s32 0, %v37_v19  ;;  %v54_v24 = vsub.s32 1, %v37_v19  ;;  %v64_v26 = vsub.s32 2, %v37_v19 }
   0x6   :  { %394 = vset.pattern.permute.xlu0 %v421_v6  ;;  %396 = vset.pattern.permute.xlu1 %v422_v7  ;;  %v29_v21 = vunpack.c.l.bf16 %v28_v20  ;;  %v74_v28 = vsub.s32 3, %v37_v19  ;;  %v310_v31 = vld [vmem:[%s552_s2] ss:$0 sm:$0xff]  ;;  %v411_v46 = vld [vmem:[%s550_s5 + $0x28] sm:$0xff]   ;;  %v412_v47 = vld [vmem:[%s550_s5 + $0x30] sm:$0xff]  }
   0x7   :  { %49 = vperm.xlu0 %394, %v27_v1   ;;  %69 = vperm.xlu1 %396, %v27_v1   ;;  %v410_v45 = vld [vmem:[%s550_s5 + $0x20] sm:$0xff]   ;;  %v413_v48 = vld [vmem:[%s550_s5 + $0x38] sm:$0xff]  }
   0x8   :  { %350 = vmatpush3.bf16.msra.mxu0 %v399_v5  ;;  %368 = vmatpush3.bf16.msra.mxu1 %v406_v14  ;;  %v39_v23 = vrot.slane %v29_v21, %v38_v22  ;;  %v55_v30 = vrot.slane %v29_v21, %v54_v24  ;;  %v65_v32 = vrot.slane %v29_v21, %v64_v26  ;;  %v311_v49 = vld [vmem:[%s553_s4] ss:$0 sm:$0xff] }
   0x9   :  { %351 = vmatprep.subr.bf16.mxu0 %v420_v4  ;;  %369 = vmatprep.subr.bf16.mxu1 %v420_v4  ;;  %v75_v33 = vrot.slane %v29_v21, %v74_v28  ;;  %v320_v57 = vld [vmem:[%s554_s6] ss:$0 sm:$0xff] }
   0xb   :  { %397 = vset.pattern.permute.xlu0 %v422_v7 }
   0xc   :  { %352 = vmatpush3.bf16.msra.mxu0 %v400_v8  ;;  %370 = vmatpush3.bf16.msra.mxu1 %v407_v15 }
   0xd   :  { %353 = vmatprep.subr.bf16.mxu0 %v420_v4  ;;  %371 = vmatprep.subr.bf16.mxu1 %v420_v4 }
  0x10   :  { %354 = vmatpush3.bf16.msra.mxu0 %v401_v9  ;;  %372 = vmatpush3.bf16.msra.mxu1 %v408_v16 }
  0x11   :  { %355 = vmatprep.subr.bf16.mxu0 %v420_v4  ;;  %373 = vmatprep.subr.bf16.mxu1 %v420_v4 }
  0x14   :  { %356 = vmatpush3.bf16.msra.mxu0 %v402_v10  ;;  %374 = vmatpush3.bf16.msra.mxu1 %v409_v17 }
  0x15   :  { %357 = vmatprep.subr.bf16.mxu0 %v420_v4  ;;  %375 = vmatprep.subr.bf16.mxu1 %v420_v4 }
  0x18   :  { %358 = vmatpush3.bf16.msra.mxu0 %v403_v11  ;;  %376 = vmatpush3.bf16.msra.mxu1 %v410_v45 }
  0x19   :  { %359 = vmatprep.subr.bf16.mxu0 %v420_v4  ;;  %377 = vmatprep.subr.bf16.mxu1 %v420_v4 }
  0x1c   :  { %360 = vmatpush3.bf16.msra.mxu0 %v404_v12  ;;  %378 = vmatpush3.bf16.msra.mxu1 %v411_v46 }
  0x1d   :  { %361 = vmatprep.subr.bf16.mxu0 %v420_v4  ;;  %379 = vmatprep.subr.bf16.mxu1 %v420_v4 }
  0x20   :  { %362 = vmatpush3.bf16.msra.mxu0 %v405_v13  ;;  %380 = vmatpush3.bf16.msra.mxu1 %v412_v47 }
  0x21   :  { %381 = vmatprep.subr.bf16.mxu1 %v420_v4 }
  0x24   :  { %382 = vmatpush3.bf16.msra.mxu1 %v413_v48 }
  0x81   :  { %v34_v25 = vpop.permute.xlu0 %33  ;;  %v60_v27 = vpop.permute.xlu1 %59 }
  0x82   :  { %v40_v29 = vmul.f32 %v39_v23, %v34_v25  ;;  %v66_v38 = vmul.f32 %v65_v32, %v60_v27 }
  0x84   :  { %v47_v36 = vadd.f32 %v310_v31, %v40_v29 }
  0x86   :  { %v50_v34 = vpop.permute.xlu0 %49  ;;  %v70_v35 = vpop.permute.xlu1 %69 }
  0x87   :  { %v56_v37 = vmul.f32 %v55_v30, %v50_v34  ;;  %v76_v40 = vmul.f32 %v75_v33, %v70_v35 }
  0x89   :  { %v57_v39 = vadd.f32 %v56_v37, %v47_v36 }
  0x8b   :  { %v67_v41 = vadd.f32 %v66_v38, %v57_v39 }
  0x8d   :  { %v77_v42 = vadd.f32 %v76_v40, %v67_v41 }
  0x8f   :  { %414 = vtanh.f32 %v77_v42 }
  0x99   :  { %v415_v43 = vpop.eup %414 }
  0x9a   :  { %v79_v44 = vpack.c.bf16 %v415_v43, %v415_v43 }
  0x9c   :  { %364 = vmatmul.mubr.bf16.vlgmr.msra.gmra.mrb[0].mxu0 %v79_v44 }
 0x16f   :  { %v185_v50 = vpop.f32.mrb[0].mxu0 }
 0x170   :  { %v186_v51 = vadd.f32 %v311_v49, %v185_v50  ;;  %v365_v52 = vpop.f32.mrb[1].mxu0 }
 0x171   :  { %v188_v53 = vpop.f32.mrb[2].mxu0 }
 0x172   :  { %416 = vtanh.f32 %v186_v51  ;;  %v366_v54 = vpop.f32.mrb[3].mxu0 }
 0x17c   :  { %v417_v55 = vpop.eup %416 }
 0x17d   :  { %v192_v56 = vpack.c.bf16 %v417_v55, %v417_v55 }
 0x17f   :  { %384 = vmatmul.mubr.bf16.vlgmr.msra.gmra.mrb[0].mxu1 %v192_v56 }
 0x252   :  { %v298_v58 = vpop.f32.mrb[0].mxu1 }
 0x253   :  { %v299_v59 = vadd.f32 %v320_v57, %v298_v58  ;;  %v385_v60 = vpop.f32.mrb[1].mxu1 }
 0x254   :  { %v301_v61 = vpop.f32.mrb[2].mxu1 }
 0x255   :  { %305 = vst.msk [vmem:[%s555_s7] sm:$0xff] %vm304_vm1, %v299_v59  ;;  %v386_v62 = vpop.f32.mrb[3].mxu1 }

// kernel: tpu_custom_call.1
= control target key start
LH: loop header
LB: loop body
LE: loop exit
PB: predicated region body
PF: predicated region fallthrough
CT: control target
= control target key end

     0   :  { %v418_v0 = vmov 0   ;;  %v419_v2 = vmov 2   ;;  %v420_v4 = vmov 0.0   ;;  %v421_v6 = vmov 1   ;;  %s548_s0 = inlined_call_operand.vmem [shape: f32[8,4], index: 0, kind: input, shape index: {}]   ;;  %s549_s3 = inlined_call_operand.vmem [shape: bf16[128,128], index: 3, kind: input, shape index: {}]   ;;  %s550_s5 = inlined_call_operand.vmem [shape: bf16[128,2], index: 5, kind: input, shape index: {}]   ;;  %s551_s1 = inlined_call_operand.vmem [shape: bf16[4,128], index: 1, kind: input, shape index: {}]   ;;  %s552_s2 = inlined_call_operand.vmem [shape: f32[1,128], index: 2, kind: input, shape index: {}]   ;;  %s553_s4 = inlined_call_operand.vmem [shape: f32[1,128], index: 4, kind: input, shape index: {}]   ;;  %s554_s6 = inlined_call_operand.vmem [shape: f32[1,2], index: 6, kind: input, shape index: {}]   ;;  %s555_s7 = inlined_call_operand.vmem [shape: f32[8,2], index: 7, kind: output, shape index: {}]  }
   0x1   :  { %393 = vset.pattern.permute.xlu0 %v418_v0  ;;  %v27_v1 = vld [vmem:[%s548_s0] sm:$0xff]  ;;  %395 = vset.pattern.permute.xlu1 %v419_v2  ;;  %v399_v5 = vld [vmem:[%s549_s3 + $0x8] sm:$0xff]   ;;  %v422_v7 = vmov 3   ;;  %v400_v8 = vld [vmem:[%s549_s3 + $0x10] sm:$0xff]   ;;  %vm423_vm0 = vmmov 0   ;;  %v36_v18 = vlaneseq  ;;  %vm304_vm1 = vcmask 15360  }
   0x2   :  { %33 = vperm.xlu0 %393, %v27_v1   ;;  %59 = vperm.xlu1 %395, %v27_v1   ;;  %v398_v3 = vld [vmem:[%s549_s3] sm:$0xff]   ;;  %v401_v9 = vld [vmem:[%s549_s3 + $0x18] sm:$0xff]   ;;  %v403_v11 = vld [vmem:[%s549_s3 + $0x28] sm:$0xff]  }
   0x3   :  { %347 = vmatprep.subr.bf16.mxu0 %v420_v4  ;;  %367 = vmatprep.subr.bf16.mxu1 %v420_v4  ;;  %v402_v10 = vld [vmem:[%s549_s3 + $0x20] sm:$0xff]   ;;  %v404_v12 = vld [vmem:[%s549_s3 + $0x30] sm:$0xff]   ;;  %v405_v13 = vld [vmem:[%s549_s3 + $0x38] sm:$0xff]   ;;  %v37_v19 = vshrl.u32 %v36_v18, 7 }
   0x4   :  { %348 = vmatpush3.bf16.msra.mxu0 %v398_v3  ;;  %363 = vmatprep.mubr.msk.bf16.mxu0 %vm423_vm0, %v420_v4  ;;  %v406_v14 = vld [vmem:[%s550_s5] sm:$0xff]   ;;  %v407_v15 = vld [vmem:[%s550_s5 + $0x8] sm:$0xff]   ;;  %v408_v16 = vld [vmem:[%s550_s5 + $0x10] sm:$0xff]  }
   0x5   :  { %349 = vmatprep.subr.bf16.mxu0 %v420_v4  ;;  %383 = vmatprep.mubr.msk.bf16.mxu1 %vm423_vm0, %v420_v4  ;;  %v409_v17 = vld [vmem:[%s550_s5 + $0x18] sm:$0xff]   ;;  %v28_v20 = vld [vmem:[%s551_s1] sm:$0x3]  ;;  %v38_v22 = vsub.s32 0, %v37_v19  ;;  %v54_v24 = vsub.s32 1, %v37_v19  ;;  %v64_v26 = vsub.s32 2, %v37_v19 }
   0x6   :  { %394 = vset.pattern.permute.xlu0 %v421_v6  ;;  %396 = vset.pattern.permute.xlu1 %v422_v7  ;;  %v29_v21 = vunpack.c.l.bf16 %v28_v20  ;;  %v74_v28 = vsub.s32 3, %v37_v19  ;;  %v310_v31 = vld [vmem:[%s552_s2] ss:$0 sm:$0xff]  ;;  %v411_v46 = vld [vmem:[%s550_s5 + $0x28] sm:$0xff]   ;;  %v412_v47 = vld [vmem:[%s550_s5 + $0x30] sm:$0xff]  }
   0x7   :  { %49 = vperm.xlu0 %394, %v27_v1   ;;  %69 = vperm.xlu1 %396, %v27_v1   ;;  %v410_v45 = vld [vmem:[%s550_s5 + $0x20] sm:$0xff]   ;;  %v413_v48 = vld [vmem:[%s550_s5 + $0x38] sm:$0xff]  }
   0x8   :  { %350 = vmatpush3.bf16.msra.mxu0 %v399_v5  ;;  %368 = vmatpush3.bf16.msra.mxu1 %v406_v14  ;;  %v39_v23 = vrot.slane %v29_v21, %v38_v22  ;;  %v55_v30 = vrot.slane %v29_v21, %v54_v24  ;;  %v65_v32 = vrot.slane %v29_v21, %v64_v26  ;;  %v311_v49 = vld [vmem:[%s553_s4] ss:$0 sm:$0xff] }
   0x9   :  { %351 = vmatprep.subr.bf16.mxu0 %v420_v4  ;;  %369 = vmatprep.subr.bf16.mxu1 %v420_v4  ;;  %v75_v33 = vrot.slane %v29_v21, %v74_v28  ;;  %v320_v57 = vld [vmem:[%s554_s6] ss:$0 sm:$0xff] }
   0xb   :  { %397 = vset.pattern.permute.xlu0 %v422_v7 }
   0xc   :  { %352 = vmatpush3.bf16.msra.mxu0 %v400_v8  ;;  %370 = vmatpush3.bf16.msra.mxu1 %v407_v15 }
   0xd   :  { %353 = vmatprep.subr.bf16.mxu0 %v420_v4  ;;  %371 = vmatprep.subr.bf16.mxu1 %v420_v4 }
  0x10   :  { %354 = vmatpush3.bf16.msra.mxu0 %v401_v9  ;;  %372 = vmatpush3.bf16.msra.mxu1 %v408_v16 }
  0x11   :  { %355 = vmatprep.subr.bf16.mxu0 %v420_v4  ;;  %373 = vmatprep.subr.bf16.mxu1 %v420_v4 }
  0x14   :  { %356 = vmatpush3.bf16.msra.mxu0 %v402_v10  ;;  %374 = vmatpush3.bf16.msra.mxu1 %v409_v17 }
  0x15   :  { %357 = vmatprep.subr.bf16.mxu0 %v420_v4  ;;  %375 = vmatprep.subr.bf16.mxu1 %v420_v4 }
  0x18   :  { %358 = vmatpush3.bf16.msra.mxu0 %v403_v11  ;;  %376 = vmatpush3.bf16.msra.mxu1 %v410_v45 }
  0x19   :  { %359 = vmatprep.subr.bf16.mxu0 %v420_v4  ;;  %377 = vmatprep.subr.bf16.mxu1 %v420_v4 }
  0x1c   :  { %360 = vmatpush3.bf16.msra.mxu0 %v404_v12  ;;  %378 = vmatpush3.bf16.msra.mxu1 %v411_v46 }
  0x1d   :  { %361 = vmatprep.subr.bf16.mxu0 %v420_v4  ;;  %379 = vmatprep.subr.bf16.mxu1 %v420_v4 }
  0x20   :  { %362 = vmatpush3.bf16.msra.mxu0 %v405_v13  ;;  %380 = vmatpush3.bf16.msra.mxu1 %v412_v47 }
  0x21   :  { %381 = vmatprep.subr.bf16.mxu1 %v420_v4 }
  0x24   :  { %382 = vmatpush3.bf16.msra.mxu1 %v413_v48 }
  0x81   :  { %v34_v25 = vpop.permute.xlu0 %33  ;;  %v60_v27 = vpop.permute.xlu1 %59 }
  0x82   :  { %v40_v29 = vmul.f32 %v39_v23, %v34_v25  ;;  %v66_v38 = vmul.f32 %v65_v32, %v60_v27 }
  0x84   :  { %v47_v36 = vadd.f32 %v310_v31, %v40_v29 }
  0x86   :  { %v50_v34 = vpop.permute.xlu0 %49  ;;  %v70_v35 = vpop.permute.xlu1 %69 }
  0x87   :  { %v56_v37 = vmul.f32 %v55_v30, %v50_v34  ;;  %v76_v40 = vmul.f32 %v75_v33, %v70_v35 }
  0x89   :  { %v57_v39 = vadd.f32 %v56_v37, %v47_v36 }
  0x8b   :  { %v67_v41 = vadd.f32 %v66_v38, %v57_v39 }
  0x8d   :  { %v77_v42 = vadd.f32 %v76_v40, %v67_v41 }
  0x8f   :  { %414 = vtanh.f32 %v77_v42 }
  0x99   :  { %v415_v43 = vpop.eup %414 }
  0x9a   :  { %v79_v44 = vpack.c.bf16 %v415_v43, %v415_v43 }
  0x9c   :  { %364 = vmatmul.mubr.bf16.vlgmr.msra.gmra.mrb[0].mxu0 %v79_v44 }
 0x16f   :  { %v185_v50 = vpop.f32.mrb[0].mxu0 }
 0x170   :  { %v186_v51 = vadd.f32 %v311_v49, %v185_v50  ;;  %v365_v52 = vpop.f32.mrb[1].mxu0 }
 0x171   :  { %v188_v53 = vpop.f32.mrb[2].mxu0 }
 0x172   :  { %416 = vtanh.f32 %v186_v51  ;;  %v366_v54 = vpop.f32.mrb[3].mxu0 }
 0x17c   :  { %v417_v55 = vpop.eup %416 }
 0x17d   :  { %v192_v56 = vpack.c.bf16 %v417_v55, %v417_v55 }
 0x17f   :  { %384 = vmatmul.mubr.bf16.vlgmr.msra.gmra.mrb[0].mxu1 %v192_v56 }
 0x252   :  { %v298_v58 = vpop.f32.mrb[0].mxu1 }
 0x253   :  { %v299_v59 = vadd.f32 %v320_v57, %v298_v58  ;;  %v385_v60 = vpop.f32.mrb[1].mxu1 }
 0x254   :  { %v301_v61 = vpop.f32.mrb[2].mxu1 }
 0x255   :  { %305 = vst.msk [vmem:[%s555_s7] sm:$0xff] %vm304_vm1, %v299_v59  ;;  %v386_v62 = vpop.f32.mrb[3].mxu1 }

</bundles_post_ra>
